<compile_context>
chip_gen: v7x
topology: tpu7x:2x2x1
jax: 0.10.0
libtpu: 0.0.40
codegen_flags: <defaults>
</compile_context>

<pallas_src>
import jax
import jax.numpy as jnp
from jax.experimental import pallas as pl
from jax.experimental.pallas import tpu as pltpu


def _critic_kernel(x_ref, w1_ref, b1_ref, w2_ref, b2_ref, w3_ref, b3_ref,
                   q_ref):
    # fc1 + ReLU : single lane-dense matmul (x already bf16 + zero-padded).
    h1 = (jnp.dot(x_ref[...], w1_ref[...], preferred_element_type=jnp.float32)
          + b1_ref[...])
    h1 = jnp.maximum(h1, 0.0).astype(jnp.bfloat16)

    # fc2 + ReLU
    h2 = (jnp.dot(h1, w2_ref[...], preferred_element_type=jnp.float32)
          + b2_ref[...])
    h2 = jnp.maximum(h2, 0.0).astype(jnp.bfloat16)

    # fc3 on the MXU with a lane-dense (TB, 128) output; only column 0 is the
    # real q-value (w3 columns 1..127 are zero), wrapper slices it out.
    q = (jnp.dot(h2, w3_ref[...], preferred_element_type=jnp.float32)
         + b3_ref[0, 0])
    q_ref[...] = q.astype(q_ref.dtype)


def _pick_tb(batch):
    """Batch-tile size: >=2 grid steps when B>=16 (v7x megacore), big tiles
    for large B (amortize ~0.35us/step on v5e/v6e), sublane-aligned."""
    if batch < 16:
        return batch
    tb = (batch + 1) // 2
    tb = max(8, (tb // 8) * 8)
    return min(tb, 1024)


def critic_forward(state, action, params):
    """Pallas implementation of Critic.forward(state, action). Returns [B,1] f32."""
    w1_pad, b1, w2, b2, w3_pad, b3 = params
    B, state_dim = state.shape
    action_dim = action.shape[1]
    in_dim = state_dim + action_dim
    k_pad, H = w1_pad.shape

    # Wrapper-side concat + bf16 cast + zero-pad to the lane-dense K the
    # padded fc1 weight expects.
    x = jnp.concatenate([state, action], axis=1).astype(jnp.bfloat16)
    if k_pad > in_dim:
        x = jnp.pad(x, ((0, 0), (0, k_pad - in_dim)))

    TB = _pick_tb(B)
    grid = (pl.cdiv(B, TB),)

    resident = lambda arr: pl.BlockSpec(arr.shape, lambda i: (0, 0))

    flops = 2 * B * (k_pad * H + H * H + H * 128)
    bytes_accessed = (
        2 * B * k_pad                              # bf16 input tile stream
        + 2 * (k_pad * H + H * H + H * 128)        # bf16 weights (resident)
        + 4 * (2 * H + 1)                          # f32 biases
        + 4 * B * 128                              # f32 lane-dense output
    )

    q_full = pl.pallas_call(
        _critic_kernel,
        out_shape=jax.ShapeDtypeStruct((B, 128), jnp.float32),
        grid=grid,
        in_specs=[
            pl.BlockSpec((TB, k_pad), lambda i: (i, 0)),             # x tile
            resident(w1_pad), resident(b1),                          # fc1
            resident(w2), resident(b2),                              # fc2
            resident(w3_pad),                                        # fc3 (padded)
            pl.BlockSpec(memory_space=pltpu.MemorySpace.SMEM),       # b3 scalar
        ],
        out_specs=pl.BlockSpec((TB, 128), lambda i: (i, 0)),
        compiler_params=pltpu.CompilerParams(
            dimension_semantics=("parallel",)),
        cost_estimate=pl.CostEstimate(
            flops=flops, transcendentals=0, bytes_accessed=bytes_accessed),
    )(x, w1_pad, b1, w2, b2, w3_pad, b3)

    return q_full[:, :1]


def init_critic_params(key, state_dim, action_dim, hidden_dim=256):
    """Deterministic synthetic init.

    Weights are pre-transposed to [in, out].  w1 is zero-padded along its
    contraction dim to a multiple of 128 (lane-dense fc1).  w3 is stored as a
    zero-padded [H, 128] block whose column 0 holds the real weights.  Matmul
    weights are bf16, biases f32.
    """
    in_dim = state_dim + action_dim
    k_pad = max(128, ((in_dim + 127) // 128) * 128)
    k1, k2, k3, k4, k5, k6 = jax.random.split(key, 6)

    def uniform(k, shape, fan_in, dtype):
        bound = 1.0 / jnp.sqrt(fan_in)
        return jax.random.uniform(k, shape, jnp.float32, -bound, bound).astype(dtype)

    w1 = uniform(k1, (in_dim, hidden_dim), in_dim, jnp.bfloat16)
    w1_pad = jnp.zeros((k_pad, hidden_dim), jnp.bfloat16).at[:in_dim].set(w1)
    b1 = uniform(k2, (1, hidden_dim), in_dim, jnp.float32)

    w2 = uniform(k3, (hidden_dim, hidden_dim), hidden_dim, jnp.bfloat16)
    b2 = uniform(k4, (1, hidden_dim), hidden_dim, jnp.float32)

    w3 = uniform(k5, (hidden_dim, 1), hidden_dim, jnp.bfloat16)
    w3_pad = jnp.zeros((hidden_dim, 128), jnp.bfloat16).at[:, :1].set(w3)
    b3 = uniform(k6, (1, 1), hidden_dim, jnp.float32)

    return (w1_pad, b1, w2, b2, w3_pad, b3)


def critic_reference(state, action, params):
    """Pure-JAX reference mirroring the kernel's numerics (bf16 matmuls, f32 acc)."""
    w1_pad, b1, w2, b2, w3_pad, b3 = params
    x = jnp.concatenate([state, action], axis=1).astype(jnp.bfloat16)
    in_dim = x.shape[1]
    h1 = jnp.dot(x, w1_pad[:in_dim], preferred_element_type=jnp.float32) + b1
    h1 = jnp.maximum(h1, 0.0).astype(jnp.bfloat16)
    h2 = jnp.dot(h1, w2, preferred_element_type=jnp.float32) + b2
    h2 = jnp.maximum(h2, 0.0).astype(jnp.bfloat16)
    q = jnp.dot(h2, w3_pad[:, :1], preferred_element_type=jnp.float32) + b3[0, 0]
    return q


if __name__ == "__main__":
    key = jax.random.PRNGKey(0)
    k_state, k_action, k_params, k_state2, k_action2 = jax.random.split(key, 5)

    # TODO(synk): bf16 weights / inputs deviate from a strict f32 PyTorch
    # Critic at the ~1e-3 level; acceptable for inference.
    batch, state_dim, action_dim, hidden_dim = 8, 16, 4, 32
    state = jax.random.normal(k_state, (batch, state_dim), jnp.float32)
    action = jax.random.normal(k_action, (batch, action_dim), jnp.float32)
    params = init_critic_params(k_params, state_dim, action_dim, hidden_dim)

    fwd = jax.jit(critic_forward)
    q = fwd(state, action, params)
    jax.block_until_ready(q)
    q_ref = critic_reference(state, action, params)
    assert q.shape == (batch, 1)
    assert jnp.allclose(q, q_ref, atol=1e-3, rtol=1e-3)

    # Second check exercising grid > 1 and a partial last batch tile.
    batch2 = 20
    state2 = jax.random.normal(k_state2, (batch2, state_dim), jnp.float32)
    action2 = jax.random.normal(k_action2, (batch2, action_dim), jnp.float32)
    q2 = jax.jit(critic_forward)(state2, action2, params)
    jax.block_until_ready(q2)
    q2_ref = critic_reference(state2, action2, params)
    assert q2.shape == (batch2, 1)
    assert jnp.allclose(q2, q2_ref, atol=1e-3, rtol=1e-3)

    print("KERNEL_OK")
</pallas_src>

<mosaic_0001>
module attributes {stable_mosaic.version = 11 : i64} {
  func.func @_critic_kernel(%arg0: i32, %arg1: memref<8x128xbf16, #tpu.memory_space<vmem>>, %arg2: memref<128x32xbf16, #tpu.memory_space<vmem>>, %arg3: memref<1x32xf32, #tpu.memory_space<vmem>>, %arg4: memref<32x32xbf16, #tpu.memory_space<vmem>>, %arg5: memref<1x32xf32, #tpu.memory_space<vmem>>, %arg6: memref<32x128xbf16, #tpu.memory_space<vmem>>, %arg7: memref<1x1xf32, #tpu.memory_space<smem>>, %arg8: memref<8x128xf32, #tpu.memory_space<vmem>>) attributes {dimension_semantics = [#tpu.dimension_semantics<parallel>], iteration_bounds = array<i64: 1>, scalar_prefetch = 0 : i64, scratch_operands = 0 : i64, tpu.core_type = #tpu.core_type<tc>, window_params = [{transform_indices = @transform_0, window_bounds = array<i64: 8, 128>}, {pipeline_mode = #tpu.pipeline_mode<synchronous>, transform_indices = @transform_1, window_bounds = array<i64: 128, 32>}, {pipeline_mode = #tpu.pipeline_mode<synchronous>, transform_indices = @transform_2, window_bounds = array<i64: 1, 32>}, {pipeline_mode = #tpu.pipeline_mode<synchronous>, transform_indices = @transform_3, window_bounds = array<i64: 32, 32>}, {pipeline_mode = #tpu.pipeline_mode<synchronous>, transform_indices = @transform_4, window_bounds = array<i64: 1, 32>}, {pipeline_mode = #tpu.pipeline_mode<synchronous>, transform_indices = @transform_5, window_bounds = array<i64: 32, 128>}, {transform_indices = @transform_6, window_bounds = array<i64: 1, 1>}, {transform_indices = @transform_7, window_bounds = array<i64: 8, 128>}]} {
    %c0 = arith.constant 0 : index
    %c0_0 = arith.constant 0 : index
    %0 = vector.load %arg1[%c0, %c0_0] : memref<8x128xbf16, #tpu.memory_space<vmem>>, vector<8x128xbf16>
    %c0_1 = arith.constant 0 : index
    %c0_2 = arith.constant 0 : index
    %1 = vector.load %arg2[%c0_1, %c0_2] : memref<128x32xbf16, #tpu.memory_space<vmem>>, vector<128x32xbf16>
    %cst = arith.constant dense<0.000000e+00> : vector<8x32xf32>
    %2 = tpu.matmul %0, %1, %cst {dimension_numbers = #tpu.dot_dimension_numbers<[1], [0], [0], [1], [0, 0, 1, 1], [], []>} : vector<8x128xbf16>, vector<128x32xbf16>, vector<8x32xf32> -> vector<8x32xf32>
    %c0_3 = arith.constant 0 : index
    %c0_4 = arith.constant 0 : index
    %3 = vector.load %arg3[%c0_3, %c0_4] : memref<1x32xf32, #tpu.memory_space<vmem>>, vector<1x32xf32>
    %4 = vector.broadcast %3 : vector<1x32xf32> to vector<8x32xf32>
    %5 = arith.addf %2, %4 : vector<8x32xf32>
    %cst_5 = arith.constant 0.000000e+00 : f32
    %6 = vector.broadcast %cst_5 : f32 to vector<8x32xf32>
    %7 = arith.maximumf %5, %6 : vector<8x32xf32>
    %8 = arith.truncf %7 : vector<8x32xf32> to vector<8x32xbf16>
    %c0_6 = arith.constant 0 : index
    %c0_7 = arith.constant 0 : index
    %9 = vector.load %arg4[%c0_6, %c0_7] : memref<32x32xbf16, #tpu.memory_space<vmem>>, vector<32x32xbf16>
    %cst_8 = arith.constant dense<0.000000e+00> : vector<8x32xf32>
    %10 = tpu.matmul %8, %9, %cst_8 {dimension_numbers = #tpu.dot_dimension_numbers<[1], [0], [0], [1], [0, 0, 1, 1], [], []>} : vector<8x32xbf16>, vector<32x32xbf16>, vector<8x32xf32> -> vector<8x32xf32>
    %c0_9 = arith.constant 0 : index
    %c0_10 = arith.constant 0 : index
    %11 = vector.load %arg5[%c0_9, %c0_10] : memref<1x32xf32, #tpu.memory_space<vmem>>, vector<1x32xf32>
    %12 = vector.broadcast %11 : vector<1x32xf32> to vector<8x32xf32>
    %13 = arith.addf %10, %12 : vector<8x32xf32>
    %cst_11 = arith.constant 0.000000e+00 : f32
    %14 = vector.broadcast %cst_11 : f32 to vector<8x32xf32>
    %15 = arith.maximumf %13, %14 : vector<8x32xf32>
    %16 = arith.truncf %15 : vector<8x32xf32> to vector<8x32xbf16>
    %c0_12 = arith.constant 0 : index
    %c0_13 = arith.constant 0 : index
    %17 = vector.load %arg6[%c0_12, %c0_13] : memref<32x128xbf16, #tpu.memory_space<vmem>>, vector<32x128xbf16>
    %cst_14 = arith.constant dense<0.000000e+00> : vector<8x128xf32>
    %18 = tpu.matmul %16, %17, %cst_14 {dimension_numbers = #tpu.dot_dimension_numbers<[1], [0], [0], [1], [0, 0, 1, 1], [], []>} : vector<8x32xbf16>, vector<32x128xbf16>, vector<8x128xf32> -> vector<8x128xf32>
    %c0_15 = arith.constant 0 : index
    %c0_16 = arith.constant 0 : index
    %19 = memref.load %arg7[%c0_15, %c0_16] : memref<1x1xf32, #tpu.memory_space<smem>>
    %20 = vector.broadcast %19 : f32 to vector<8x128xf32>
    %21 = arith.addf %18, %20 : vector<8x128xf32>
    %c0_17 = arith.constant 0 : index
    %c0_18 = arith.constant 0 : index
    %22 = vector.load %arg8[%c0_17, %c0_18] : memref<8x128xf32, #tpu.memory_space<vmem>>, vector<8x128xf32>
    tpu.vector_store %arg8[%c0_17, %c0_18], %21 {strides = array<i32>} : memref<8x128xf32, #tpu.memory_space<vmem>>, vector<8x128xf32>,
    return
  }
  func.func @transform_0(%arg0: i32) -> (i32, i32) {
    %c0_i32 = arith.constant 0 : i32
    %c0_i32_0 = arith.constant 0 : i32
    return %arg0, %c0_i32 : i32, i32
  }
  func.func @transform_1(%arg0: i32) -> (i32, i32) {
    %c0_i32 = arith.constant 0 : i32
    %c0_i32_0 = arith.constant 0 : i32
    %c0_i32_1 = arith.constant 0 : i32
    return %c0_i32, %c0_i32_0 : i32, i32
  }
  func.func @transform_2(%arg0: i32) -> (i32, i32) {
    %c0_i32 = arith.constant 0 : i32
    %c0_i32_0 = arith.constant 0 : i32
    %c0_i32_1 = arith.constant 0 : i32
    return %c0_i32, %c0_i32_0 : i32, i32
  }
  func.func @transform_3(%arg0: i32) -> (i32, i32) {
    %c0_i32 = arith.constant 0 : i32
    %c0_i32_0 = arith.constant 0 : i32
    %c0_i32_1 = arith.constant 0 : i32
    return %c0_i32, %c0_i32_0 : i32, i32
  }
  func.func @transform_4(%arg0: i32) -> (i32, i32) {
    %c0_i32 = arith.constant 0 : i32
    %c0_i32_0 = arith.constant 0 : i32
    %c0_i32_1 = arith.constant 0 : i32
    return %c0_i32, %c0_i32_0 : i32, i32
  }
  func.func @transform_5(%arg0: i32) -> (i32, i32) {
    %c0_i32 = arith.constant 0 : i32
    %c0_i32_0 = arith.constant 0 : i32
    %c0_i32_1 = arith.constant 0 : i32
    return %c0_i32, %c0_i32_0 : i32, i32
  }
  func.func @transform_6(%arg0: i32) -> (i32, i32) {
    %c0_i32 = arith.constant 0 : i32
    %c0_i32_0 = arith.constant 0 : i32
    %c0_i32_1 = arith.constant 0 : i32
    return %c0_i32, %c0_i32_0 : i32, i32
  }
  func.func @transform_7(%arg0: i32) -> (i32, i32) {
    %c0_i32 = arith.constant 0 : i32
    %c0_i32_0 = arith.constant 0 : i32
    return %arg0, %c0_i32 : i32, i32
  }
}

</mosaic_0001>

<bundles_post_ra>
// kernel: critic_forward.1
= control target key start
LH: loop header
LB: loop body
LE: loop exit
PB: predicated region body
PF: predicated region fallthrough
CT: control target
= control target key end

     0   :  { %v358_v0 = vmov 0.0   ;;  %vm359_vm0 = vmmov 0   ;;  %vm165_vm1 = vcmask 261120   ;;  %s456_s1 = inlined_call_operand.vmem [shape: bf16[128,32], index: 1, kind: input, shape index: {}]   ;;  %s457_s0 = inlined_call_operand.vmem [shape: bf16[8,128], index: 0, kind: input, shape index: {}]   ;;  %s458_s3 = inlined_call_operand.vmem [shape: bf16[32,32], index: 3, kind: input, shape index: {}]   ;;  %s459_s5 = inlined_call_operand.vmem [shape: bf16[32,128], index: 5, kind: input, shape index: {}]   ;;  %s460_s2 = inlined_call_operand.vmem [shape: f32[1,32], index: 2, kind: input, shape index: {}]   ;;  %s461_s4 = inlined_call_operand.vmem [shape: f32[1,32], index: 4, kind: input, shape index: {}]   ;;  %s462_s6 = inlined_call_operand.<no memory space> [shape: f32[1,1], index: 6, kind: input, shape index: {}]   ;;  %s463_s7 = inlined_call_operand.vmem [shape: f32[8,128], index: 7, kind: output, shape index: {}]  }
   0x1   :  { %308 = vmatprep.subr.bf16.mxu0 %v358_v0  ;;  %v346_v1 = vld [vmem:[%s456_s1] sm:$0xff]   ;;  %324 = vmatprep.mubr.msk.bf16.mxu0 %vm359_vm0, %v358_v0  ;;  %v347_v2 = vld [vmem:[%s456_s1 + $0x8] sm:$0xff]   ;;  %v348_v3 = vld [vmem:[%s456_s1 + $0x10] sm:$0xff]   ;;  %v216_v30 = vstv %s462_s6 }
   0x2   :  { %328 = vmatprep.subr.bf16.mxu1 %v358_v0  ;;  %332 = vmatprep.mubr.msk.bf16.mxu1 %vm359_vm0, %v358_v0  ;;  %v349_v4 = vld [vmem:[%s456_s1 + $0x18] sm:$0xff]   ;;  %v350_v5 = vld [vmem:[%s456_s1 + $0x20] sm:$0xff]   ;;  %v351_v6 = vld [vmem:[%s456_s1 + $0x28] sm:$0xff]  }
   0x3   :  { %309 = vmatpush3.bf16.msra.mxu0 %v346_v1  ;;  %v352_v7 = vld [vmem:[%s456_s1 + $0x30] sm:$0xff]   ;;  %v353_v8 = vld [vmem:[%s456_s1 + $0x38] sm:$0xff]   ;;  %v28_v9 = vld [vmem:[%s457_s0] sm:$0xf] }
   0x4   :  { %310 = vmatprep.subr.bf16.mxu0 %v358_v0  ;;  %v354_v10 = vld [vmem:[%s458_s3] sm:$0xff]   ;;  %v355_v11 = vld [vmem:[%s458_s3 + $0x8] sm:$0xff]  }
   0x5   :  { %329 = vmatpush3.bf16.msra.mxu1 %v354_v10  ;;  %v277_v12 = vld [vmem:[%s460_s2] ss:$0 sm:$0xff]  ;;  %v357_v21 = vld [vmem:[%s459_s5 + $0x8] sm:$0xff]  }
   0x6   :  { %330 = vmatprep.subr.bf16.mxu1 %v358_v0  ;;  %v356_v19 = vld [vmem:[%s459_s5] sm:$0xff]  }
   0x7   :  { %311 = vmatpush3.bf16.msra.mxu0 %v347_v2  ;;  %v286_v22 = vld [vmem:[%s461_s4] ss:$0 sm:$0xff] }
   0x8   :  { %312 = vmatprep.subr.bf16.mxu0 %v358_v0 }
   0x9   :  { %331 = vmatpush3.bf16.msra.mxu1 %v355_v11 }
   0xa   :  { %336 = vmatprep.subr.bf16.mxu1 %v358_v0 }
   0xb   :  { %313 = vmatpush3.bf16.msra.mxu0 %v348_v3 }
   0xc   :  { %314 = vmatprep.subr.bf16.mxu0 %v358_v0 }
   0xf   :  { %315 = vmatpush3.bf16.msra.mxu0 %v349_v4 }
  0x10   :  { %316 = vmatprep.subr.bf16.mxu0 %v358_v0 }
  0x13   :  { %317 = vmatpush3.bf16.msra.mxu0 %v350_v5 }
  0x14   :  { %318 = vmatprep.subr.bf16.mxu0 %v358_v0 }
  0x17   :  { %319 = vmatpush3.bf16.msra.mxu0 %v351_v6 }
  0x18   :  { %320 = vmatprep.subr.bf16.mxu0 %v358_v0 }
  0x1b   :  { %321 = vmatpush3.bf16.msra.mxu0 %v352_v7 }
  0x1c   :  { %322 = vmatprep.subr.bf16.mxu0 %v358_v0 }
  0x1f   :  { %323 = vmatpush3.bf16.msra.mxu0 %v353_v8 }
  0x22   :  { %325 = vmatmul.mubr.bf16.vlgmr.msra.gmra.mrb[0].mxu0 %v28_v9 }
  0xf5   :  { %v134_v13 = vpop.f32.mrb[0].mxu0 }
  0xf6   :  { %v135_v14 = vadd.f32 %v277_v12, %v134_v13  ;;  %v326_v15 = vpop.f32.mrb[1].mxu0 }
  0xf7   :  { %v137_v16 = vpop.f32.mrb[2].mxu0 }
  0xf8   :  { %v140_v17 = vmax.f32 %v135_v14, 0.0  ;;  %v327_v18 = vpop.f32.mrb[3].mxu0 }
  0xfa   :  { %v141_v20 = vpack.c.bf16 %v140_v17, %v140_v17 }
  0xfc   :  { %333 = vmatmul.mubr.msk.bf16.vlgmr.msra.gmra.mrb[0].mxu1 %vm165_vm1, %v141_v20 }
  0xfd   :  { %337 = vmatpush3.bf16.msra.mxu1 %v356_v19  ;;  %340 = vmatprep.mubr.msk.bf16.mxu1 %vm359_vm0, %v358_v0 }
  0xfe   :  { %338 = vmatprep.subr.bf16.mxu1 %v358_v0 }
 0x101   :  { %339 = vmatpush3.bf16.msra.mxu1 %v357_v21 }
 0x1cf   :  { %v203_v23 = vpop.f32.mrb[0].mxu1 }
 0x1d0   :  { %v204_v24 = vadd.f32 %v286_v22, %v203_v23  ;;  %v334_v25 = vpop.f32.mrb[1].mxu1 }
 0x1d1   :  { %v206_v26 = vpop.f32.mrb[2].mxu1 }
 0x1d2   :  { %v209_v27 = vmax.f32 %v204_v24, 0.0  ;;  %v335_v28 = vpop.f32.mrb[3].mxu1 }
 0x1d4   :  { %v210_v29 = vpack.c.bf16 %v209_v27, %v209_v27 }
 0x1d6   :  { %341 = vmatmul.mubr.msk.bf16.vlgmr.msra.gmra.mrb[4].mxu1 %vm165_vm1, %v210_v29 }
 0x2a9   :  { %v266_v31 = vpop.f32.mrb[4].mxu1 }
 0x2aa   :  { %v267_v32 = vadd.f32 %v266_v31, %v216_v30  ;;  %v342_v33 = vpop.f32.mrb[5].mxu1 }
 0x2ab   :  { %v269_v34 = vpop.f32.mrb[6].mxu1 }
 0x2ac   :  { %272 = vst [vmem:[%s463_s7] sm:$0xff] %v267_v32  ;;  %v343_v35 = vpop.f32.mrb[7].mxu1 }

</bundles_post_ra>
